<compile_context>
chip_gen: v7x
topology: tpu7x:2x2x1
jax: 0.10.0
libtpu: 0.0.40
codegen_flags: <defaults>
</compile_context>

<pallas_src>
import jax
import jax.numpy as jnp
from jax.experimental import pallas as pl
from jax.experimental.pallas import tpu as pltpu


# ---------------------------------------------------------------------------
# Small helpers
# ---------------------------------------------------------------------------
def _round_up(v, m):
    return (v + m - 1) // m * m


def _usable_vmem_bytes():
    """Generation-aware VMEM budget: ~48 MiB on v7x (64 MiB physical),
    ~96 MiB on v5e / v6e (128 MiB physical)."""
    cap = 64 << 20                                # safe default if the query fails
    try:
        info = pltpu.get_tpu_info()
        cap = int(getattr(info, "vmem_capacity_bytes", cap)) or cap
    except Exception:
        pass
    return max(16 << 20, (cap * 3) // 4)


def _sublane_multiple(itemsize):
    return max(8, 32 // itemsize)                 # 8 for f32, 16 for bf16, 32 for int8


def _padded_slab_bytes(C, S, itemsize):
    return _round_up(C, _sublane_multiple(itemsize)) * _round_up(S, 128) * itemsize


def _pick_spatial_tile(S, C, itemsize, n_buffers, budget, max_tile=None):
    """Largest lane-dense spatial tile for a streaming pass.

    Returns either the full S (single block: always a legal block shape) or a
    multiple of 128 <= S; an S that is not a multiple of the tile is handled via
    a masked / partially-written tail tile rather than a whole-row fallback.
    """
    col_bytes = _round_up(C, _sublane_multiple(itemsize)) * 128 * itemsize
    cap = max(128, (int(budget * 0.8) // (n_buffers * col_bytes)) * 128)
    if max_tile is not None:
        cap = max(128, min(cap, (max_tile // 128) * 128))
    if S <= cap:
        return S
    return cap


# ---------------------------------------------------------------------------
# In-kernel building blocks (shared by the fused and two-pass paths)
# ---------------------------------------------------------------------------
def _spatial_sum_f32(x):
    """Per-channel sum over the spatial (lane) axis with f32 accumulation."""
    if x.dtype == jnp.float32:
        return jnp.sum(x, axis=1, keepdims=True)                       # exact f32
    # Sub-f32: MXU matvec against a ones vector accumulates in f32 without
    # materializing an f32 copy of the tile.
    ones = jnp.ones((x.shape[1], 1), dtype=x.dtype)
    return jax.lax.dot_general(x, ones, (((1,), (0,)), ((), ())),
                               preferred_element_type=jnp.float32)


def _channel_scale(mean_col, w1t, b1_row, w2, b2_col):
    """cSE excitation: sigmoid(W2 @ relu(W1 @ mean + b1) + b2), exact f32.

    Parameter layouts are chosen so no in-kernel transposes are needed:
      mean_col (C, 1), w1t (C, Cred) [= fc1.weight^T], b1_row (1, Cred),
      w2 (C, Cred) [= fc2.weight], b2_col (C, 1)  ->  result (C, 1).
    """
    h = jax.nn.relu(jnp.sum(w1t * mean_col, axis=0, keepdims=True) + b1_row)   # (1, Cred)
    return jax.nn.sigmoid(jnp.sum(w2 * h, axis=1, keepdims=True) + b2_col)     # (C, 1)


def _apply_cs_se(x, ch_col, ws_col, ws_row, bias):
    """max(x * ch, x * sigmoid(conv1x1(x) + b)) on a resident (C, tS) tile.

    Both scales are sigmoid outputs (strictly > 0); the direct max-of-products
    form (2 muls + 1 max) keeps the streaming pass DMA-bound with few live tiles.
    """
    if x.dtype == jnp.float32:
        # Exact f32: VPU multiply + cross-sublane reduce (x is already f32).
        g = jnp.sum(x * ws_col, axis=0, keepdims=True) + bias          # (1, tS) f32
    else:
        # Sub-f32: MXU matvec with f32 accumulation (no f32 copy of the tile,
        # keeps the VPU free — matters most on v5e and for bf16 everywhere).
        g = jax.lax.dot_general(ws_row, x, (((1,), (0,)), ((), ())),
                                preferred_element_type=jnp.float32) + bias
    sp = jax.nn.sigmoid(g)                                             # (1, tS) f32
    if x.dtype == jnp.float32:
        return jnp.maximum(x * ch_col, x * sp)
    # Multiply in the input dtype (native bf16 VPU on v6e/v7x); scales downcast first.
    return jnp.maximum(x * ch_col.astype(x.dtype), x * sp.astype(x.dtype))


# ---------------------------------------------------------------------------
# Fused single-pass kernel: grid=(B,), whole (C, S) slab resident in VMEM.
# ---------------------------------------------------------------------------
def _fused_kernel(x_ref, w1t_ref, b1_ref, w2_ref, b2_ref, wsc_ref, wsr_ref, bs_ref, o_ref):
    x = x_ref[0]                                                       # (C, S)
    mean_col = _spatial_sum_f32(x) * (1.0 / x.shape[1])                # (C, 1) f32
    ch = _channel_scale(mean_col, w1t_ref[...], b1_ref[...],
                        w2_ref[...], b2_ref[...])                      # (C, 1) f32
    o_ref[0] = _apply_cs_se(x, ch, wsc_ref[...], wsr_ref[...],
                            bs_ref[0]).astype(o_ref.dtype)


# ---------------------------------------------------------------------------
# Two-pass fallback kernels
# ---------------------------------------------------------------------------
def _make_squeeze_kernel(S, tile_s):
    """Phase 1: per-(batch, channel) spatial sum, f32 accumulation, masked tail."""
    ragged = (S % tile_s) != 0

    def kernel(x_ref, sum_ref, acc_ref):
        s = pl.program_id(1)

        @pl.when(s == 0)
        def _init():
            acc_ref[...] = jnp.zeros_like(acc_ref)

        x = x_ref[0]                                                   # (C, tile_s)
        if ragged:
            # The tail tile's out-of-bounds lanes hold stale VMEM data: mask them.
            lane = jax.lax.broadcasted_iota(jnp.int32, x.shape, 1)
            x = jnp.where(s * tile_s + lane < S, x, jnp.zeros_like(x))

        # The lane reduction lowers to per-vreg VPU adds plus one cross-lane XLU
        # reduce per (large) tile, which hides under the HBM DMA on this path.
        acc_ref[...] += jnp.sum(x.astype(jnp.float32), axis=1, keepdims=True)

        @pl.when(s == pl.num_programs(1) - 1)
        def _finalize():
            sum_ref[0] = acc_ref[...]

    return kernel


def _apply_kernel(x_ref, ch_ref, wsc_ref, wsr_ref, bs_ref, o_ref):
    """Phase 3: streaming cSE/sSE apply.  Tail tiles need no mask: out-of-bounds
    lanes compute garbage that the partial writeback simply drops."""
    x = x_ref[0]                                                       # (C, tS)
    o_ref[0] = _apply_cs_se(x, ch_ref[0], wsc_ref[...], wsr_ref[...],
                            bs_ref[0]).astype(o_ref.dtype)


# ---------------------------------------------------------------------------
# Wrapper
# ---------------------------------------------------------------------------
def channel_spatial_se(x, fc1_w, fc1_b, fc2_w, fc2_b, conv_w, conv_b, *,
                       force_two_pass=False, max_spatial_tile=None):
    """ChannelSpatialSELayer forward.

    x: (B, C, H, W); parameters use the PyTorch shapes:
      fc1_w (Cred, C), fc1_b (Cred,), fc2_w (C, Cred), fc2_b (C,),
      conv_w (1, C, 1, 1), conv_b (1,).
    `force_two_pass` / `max_spatial_tile` exist only to exercise the fallback path.
    """
    B, C, H, W = x.shape
    S = H * W
    Cred = fc1_w.shape[0]
    x3 = x.reshape(B, C, S)
    itemsize = jnp.dtype(x.dtype).itemsize
    budget = _usable_vmem_bytes()

    f32 = jnp.float32
    # Parameter layouts the kernels consume (all tiny; chosen to avoid in-kernel transposes).
    w1t = fc1_w.astype(f32).T                        # (C, Cred)
    b1r = fc1_b.astype(f32).reshape(1, Cred)         # (1, Cred)
    w2 = fc2_w.astype(f32)                           # (C, Cred)
    b2c = fc2_b.astype(f32).reshape(C, 1)            # (C, 1)
    wsc = conv_w.reshape(C, 1).astype(f32)           # sSE 1x1 conv weight, column (f32 VPU path)
    wsr = conv_w.reshape(1, C).astype(x.dtype)       # same weight, row (MXU path, sub-f32 inputs)
    bs = conv_b.reshape(1).astype(f32)               # sSE bias -> SMEM scalar

    # ---- Fused single-pass path: one HBM read + one HBM write of x ----
    slab = _padded_slab_bytes(C, S, itemsize)
    slab_f32 = _padded_slab_bytes(C, S, 4)
    fused_need = 4 * slab + 4 * slab_f32 + (4 << 20)     # 2x-buffered x/out + f32 temps + slack
    if (not force_two_pass) and fused_need <= budget:
        out3 = pl.pallas_call(
            _fused_kernel,
            out_shape=jax.ShapeDtypeStruct((B, C, S), x.dtype),
            grid_spec=pltpu.PrefetchScalarGridSpec(
                num_scalar_prefetch=0,
                grid=(B,),
                in_specs=[
                    pl.BlockSpec((1, C, S), lambda b: (b, 0, 0)),        # x slab
                    pl.BlockSpec((C, Cred), lambda b: (0, 0)),           # fc1.weight^T
                    pl.BlockSpec((1, Cred), lambda b: (0, 0)),           # fc1.bias
                    pl.BlockSpec((C, Cred), lambda b: (0, 0)),           # fc2.weight
                    pl.BlockSpec((C, 1), lambda b: (0, 0)),              # fc2.bias
                    pl.BlockSpec((C, 1), lambda b: (0, 0)),              # sSE weight (col)
                    pl.BlockSpec((1, C), lambda b: (0, 0)),              # sSE weight (row)
                    pl.BlockSpec(memory_space=pltpu.MemorySpace.SMEM),   # sSE bias
                ],
                out_specs=pl.BlockSpec((1, C, S), lambda b: (b, 0, 0)),
            ),
            compiler_params=pltpu.CompilerParams(
                dimension_semantics=("parallel",),
                vmem_limit_bytes=budget,
            ),
        )(x3, w1t, b1r, w2, b2c, wsc, wsr, bs)
        return out3.reshape(B, C, H, W)

    # ---- Two-pass fallback for slabs that do not fit on chip ----
    # Phase 3 pipelines x and out plus elementwise temps; Phase 1 only x, so it
    # gets a ~2x larger spatial tile for the same VMEM footprint.
    t3 = _pick_spatial_tile(S, C, itemsize, n_buffers=8, budget=budget,
                            max_tile=max_spatial_tile)
    t1 = _pick_spatial_tile(S, C, itemsize, n_buffers=4, budget=budget,
                            max_tile=None if max_spatial_tile is None else 2 * max_spatial_tile)

    # Phase 1: spatial sums (f32), S tiled, masked ragged tail.
    sums = pl.pallas_call(
        _make_squeeze_kernel(S, t1),
        out_shape=jax.ShapeDtypeStruct((B, C, 1), jnp.float32),
        grid_spec=pltpu.PrefetchScalarGridSpec(
            num_scalar_prefetch=0,
            grid=(B, pl.cdiv(S, t1)),
            in_specs=[pl.BlockSpec((1, C, t1), lambda b, s: (b, 0, s))],
            out_specs=pl.BlockSpec((1, C, 1), lambda b, s: (b, 0, 0)),
            scratch_shapes=[pltpu.VMEM((C, 1), jnp.float32)],
        ),
        compiler_params=pltpu.CompilerParams(
            dimension_semantics=("parallel", "arbitrary"),
            vmem_limit_bytes=budget,
        ),
    )(x3)

    # Phase 2: tiny FC stack in plain JAX, exact f32 elementwise (negligible flops).
    mean = sums[:, :, 0] * (1.0 / S)                                             # (B, C)
    h = jax.nn.relu(jnp.sum(mean[:, :, None] * w1t[None], axis=1) + b1r)         # (B, Cred)
    ch = jax.nn.sigmoid(jnp.sum(w2[None] * h[:, None, :], axis=2)
                        + fc2_b.astype(f32)[None, :])                            # (B, C)
    ch_scale = ch[:, :, None]                                                    # (B, C, 1)

    # Phase 3: streaming apply, S tiled, both grid axes parallel (2-TC sharding on v7x).
    out3 = pl.pallas_call(
        _apply_kernel,
        out_shape=jax.ShapeDtypeStruct((B, C, S), x.dtype),
        grid_spec=pltpu.PrefetchScalarGridSpec(
            num_scalar_prefetch=0,
            grid=(B, pl.cdiv(S, t3)),
            in_specs=[
                pl.BlockSpec((1, C, t3), lambda b, s: (b, 0, s)),        # x tile
                pl.BlockSpec((1, C, 1), lambda b, s: (b, 0, 0)),         # channel scale
                pl.BlockSpec((C, 1), lambda b, s: (0, 0)),               # sSE weight (col)
                pl.BlockSpec((1, C), lambda b, s: (0, 0)),               # sSE weight (row)
                pl.BlockSpec(memory_space=pltpu.MemorySpace.SMEM),       # sSE bias
            ],
            out_specs=pl.BlockSpec((1, C, t3), lambda b, s: (b, 0, s)),
        ),
        compiler_params=pltpu.CompilerParams(
            dimension_semantics=("parallel", "parallel"),
            vmem_limit_bytes=budget,
        ),
    )(x3, ch_scale, wsc, wsr, bs)
    return out3.reshape(B, C, H, W)


# ---------------------------------------------------------------------------
# Pure-JAX reference (mirror of the PyTorch forward, exact f32 elementwise math).
# ---------------------------------------------------------------------------
def reference(x, fc1_w, fc1_b, fc2_w, fc2_b, conv_w, conv_b):
    B, C, H, W = x.shape
    sq = x.reshape(B, C, -1).mean(axis=2)                                        # (B, C)
    h = jax.nn.relu(jnp.sum(sq[:, None, :] * fc1_w[None], axis=2) + fc1_b)       # (B, Cred)
    s = jax.nn.sigmoid(jnp.sum(h[:, None, :] * fc2_w[None], axis=2) + fc2_b)     # (B, C)
    cse = x * s[:, :, None, None]
    g = jnp.sum(x * conv_w.reshape(1, C, 1, 1), axis=1, keepdims=True) + conv_b[0]
    sse = x * jax.nn.sigmoid(g)
    return jnp.maximum(cse, sse)


if __name__ == "__main__":
    B, C, reduction_ratio = 2, 4, 2
    Cred = C // reduction_ratio

    key = jax.random.PRNGKey(0)
    kx, k1, k2, k3, k4, k5, k6, kx2 = jax.random.split(key, 8)

    fc1_w = jax.random.normal(k1, (Cred, C), dtype=jnp.float32) * 0.5       # fc1.weight
    fc1_b = jax.random.normal(k2, (Cred,), dtype=jnp.float32) * 0.1         # fc1.bias
    fc2_w = jax.random.normal(k3, (C, Cred), dtype=jnp.float32) * 0.5       # fc2.weight
    fc2_b = jax.random.normal(k4, (C,), dtype=jnp.float32) * 0.1            # fc2.bias
    conv_w = jax.random.normal(k5, (1, C, 1, 1), dtype=jnp.float32) * 0.5   # sSE conv weight
    conv_b = jax.random.normal(k6, (1,), dtype=jnp.float32) * 0.1           # sSE conv bias
    params = (fc1_w, fc1_b, fc2_w, fc2_b, conv_w, conv_b)

    def check(out, ref, name):
        assert out.shape == ref.shape, name
        assert jnp.allclose(out, ref, atol=2e-5, rtol=2e-5), f"mismatch vs reference: {name}"

    # 1) Fused single-pass path (the default for shapes that fit on chip).
    x = jax.random.normal(kx, (B, C, 16, 16), dtype=jnp.float32)
    ref = reference(x, *params)
    out = jax.block_until_ready(channel_spatial_se(x, *params))
    check(out, ref, "fused")

    # 2) Two-pass fallback, forced, with small tiles (multi-step spatial grid).
    out2 = jax.block_until_ready(
        channel_spatial_se(x, *params, force_two_pass=True, max_spatial_tile=128))
    check(out2, ref, "two-pass")

    # 3) Two-pass fallback on a ragged spatial size (masked / partial tail tiles).
    xr = jax.random.normal(kx2, (B, C, 20, 20), dtype=jnp.float32)
    refr = reference(xr, *params)
    outr = jax.block_until_ready(
        channel_spatial_se(xr, *params, force_two_pass=True, max_spatial_tile=128))
    check(outr, refr, "two-pass ragged")

    print("KERNEL_OK")
</pallas_src>

<mosaic_0001>
module attributes {stable_mosaic.version = 11 : i64} {
  func.func @_fused_kernel(%arg0: i32, %arg1: memref<1x4x256xf32, #tpu.memory_space<vmem>>, %arg2: memref<4x2xf32, #tpu.memory_space<vmem>>, %arg3: memref<1x2xf32, #tpu.memory_space<vmem>>, %arg4: memref<4x2xf32, #tpu.memory_space<vmem>>, %arg5: memref<4x1xf32, #tpu.memory_space<vmem>>, %arg6: memref<4x1xf32, #tpu.memory_space<vmem>>, %arg7: memref<1x4xf32, #tpu.memory_space<vmem>>, %arg8: memref<1xf32, #tpu.memory_space<smem>>, %arg9: memref<1x4x256xf32, #tpu.memory_space<vmem>>) attributes {dimension_semantics = [#tpu.dimension_semantics<parallel>], iteration_bounds = array<i64: 2>, scalar_prefetch = 0 : i64, scratch_operands = 0 : i64, tpu.core_type = #tpu.core_type<tc>, window_params = [{transform_indices = @transform_0, window_bounds = array<i64: 1, 4, 256>}, {pipeline_mode = #tpu.pipeline_mode<synchronous>, transform_indices = @transform_1, window_bounds = array<i64: 4, 2>}, {pipeline_mode = #tpu.pipeline_mode<synchronous>, transform_indices = @transform_2, window_bounds = array<i64: 1, 2>}, {pipeline_mode = #tpu.pipeline_mode<synchronous>, transform_indices = @transform_3, window_bounds = array<i64: 4, 2>}, {pipeline_mode = #tpu.pipeline_mode<synchronous>, transform_indices = @transform_4, window_bounds = array<i64: 4, 1>}, {pipeline_mode = #tpu.pipeline_mode<synchronous>, transform_indices = @transform_5, window_bounds = array<i64: 4, 1>}, {pipeline_mode = #tpu.pipeline_mode<synchronous>, transform_indices = @transform_6, window_bounds = array<i64: 1, 4>}, {transform_indices = @transform_7, window_bounds = array<i64: 1>}, {transform_indices = @transform_8, window_bounds = array<i64: 1, 4, 256>}]} {
    %c0 = arith.constant 0 : index
    %c0_0 = arith.constant 0 : index
    %c0_1 = arith.constant 0 : index
    %0 = vector.load %arg1[%c0, %c0_0, %c0_1] : memref<1x4x256xf32, #tpu.memory_space<vmem>>, vector<1x4x256xf32>
    %1 = vector.shape_cast %0 : vector<1x4x256xf32> to vector<4x256xf32>
    %cst = arith.constant dense<0.000000e+00> : vector<4xf32>
    %2 = vector.multi_reduction <add>, %1, %cst [1] : vector<4x256xf32> to vector<4xf32>
    %3 = vector.shape_cast %2 : vector<4xf32> to vector<4x1xf32>
    %cst_2 = arith.constant 3.906250e-03 : f32
    %4 = vector.broadcast %cst_2 : f32 to vector<4x1xf32>
    %5 = arith.mulf %3, %4 : vector<4x1xf32>
    %c0_3 = arith.constant 0 : index
    %c0_4 = arith.constant 0 : index
    %6 = vector.load %arg2[%c0_3, %c0_4] : memref<4x2xf32, #tpu.memory_space<vmem>>, vector<4x2xf32>
    %c0_5 = arith.constant 0 : index
    %c0_6 = arith.constant 0 : index
    %7 = vector.load %arg3[%c0_5, %c0_6] : memref<1x2xf32, #tpu.memory_space<vmem>>, vector<1x2xf32>
    %c0_7 = arith.constant 0 : index
    %c0_8 = arith.constant 0 : index
    %8 = vector.load %arg4[%c0_7, %c0_8] : memref<4x2xf32, #tpu.memory_space<vmem>>, vector<4x2xf32>
    %c0_9 = arith.constant 0 : index
    %c0_10 = arith.constant 0 : index
    %9 = vector.load %arg5[%c0_9, %c0_10] : memref<4x1xf32, #tpu.memory_space<vmem>>, vector<4x1xf32>
    %10 = vector.broadcast %5 : vector<4x1xf32> to vector<4x2xf32>
    %11 = arith.mulf %6, %10 : vector<4x2xf32>
    %cst_11 = arith.constant dense<0.000000e+00> : vector<2xf32>
    %12 = vector.multi_reduction <add>, %11, %cst_11 [0] : vector<4x2xf32> to vector<2xf32>
    %13 = vector.shape_cast %12 : vector<2xf32> to vector<1x2xf32>
    %14 = arith.addf %13, %7 : vector<1x2xf32>
    %cst_12 = arith.constant 0.000000e+00 : f32
    %15 = vector.broadcast %cst_12 : f32 to vector<1x2xf32>
    %16 = arith.maximumf %14, %15 : vector<1x2xf32>
    %17 = vector.broadcast %16 : vector<1x2xf32> to vector<4x2xf32>
    %18 = arith.mulf %8, %17 : vector<4x2xf32>
    %cst_13 = arith.constant dense<0.000000e+00> : vector<4xf32>
    %19 = vector.multi_reduction <add>, %18, %cst_13 [1] : vector<4x2xf32> to vector<4xf32>
    %20 = vector.shape_cast %19 : vector<4xf32> to vector<4x1xf32>
    %21 = arith.addf %20, %9 : vector<4x1xf32>
    %22 = arith.negf %21 : vector<4x1xf32>
    %23 = math.exp %22 : vector<4x1xf32>
    %cst_14 = arith.constant 1.000000e+00 : f32
    %24 = vector.broadcast %cst_14 : f32 to vector<4x1xf32>
    %25 = arith.addf %24, %23 : vector<4x1xf32>
    %26 = arith.divf %24, %25 : vector<4x1xf32>
    %c0_15 = arith.constant 0 : index
    %c0_16 = arith.constant 0 : index
    %27 = vector.load %arg6[%c0_15, %c0_16] : memref<4x1xf32, #tpu.memory_space<vmem>>, vector<4x1xf32>
    %c0_17 = arith.constant 0 : index
    %28 = memref.load %arg8[%c0_17] : memref<1xf32, #tpu.memory_space<smem>>
    %29 = vector.broadcast %27 : vector<4x1xf32> to vector<4x256xf32>
    %30 = arith.mulf %1, %29 : vector<4x256xf32>
    %cst_18 = arith.constant dense<0.000000e+00> : vector<256xf32>
    %31 = vector.multi_reduction <add>, %30, %cst_18 [0] : vector<4x256xf32> to vector<256xf32>
    %32 = vector.shape_cast %31 : vector<256xf32> to vector<1x256xf32>
    %33 = vector.broadcast %28 : f32 to vector<1x256xf32>
    %34 = arith.addf %32, %33 : vector<1x256xf32>
    %35 = arith.negf %34 : vector<1x256xf32>
    %36 = math.exp %35 : vector<1x256xf32>
    %cst_19 = arith.constant 1.000000e+00 : f32
    %37 = vector.broadcast %cst_19 : f32 to vector<1x256xf32>
    %38 = arith.addf %37, %36 : vector<1x256xf32>
    %39 = arith.divf %37, %38 : vector<1x256xf32>
    %40 = vector.broadcast %26 : vector<4x1xf32> to vector<4x256xf32>
    %41 = arith.mulf %1, %40 : vector<4x256xf32>
    %42 = vector.broadcast %39 : vector<1x256xf32> to vector<4x256xf32>
    %43 = arith.mulf %1, %42 : vector<4x256xf32>
    %44 = arith.maximumf %41, %43 : vector<4x256xf32>
    %c0_20 = arith.constant 0 : index
    %c0_21 = arith.constant 0 : index
    %c0_22 = arith.constant 0 : index
    %45 = vector.load %arg9[%c0_20, %c0_21, %c0_22] : memref<1x4x256xf32, #tpu.memory_space<vmem>>, vector<1x4x256xf32>
    %46 = vector.shape_cast %45 : vector<1x4x256xf32> to vector<4x256xf32>
    %47 = vector.shape_cast %44 : vector<4x256xf32> to vector<1x4x256xf32>
    tpu.vector_store %arg9[%c0_20, %c0_21, %c0_22], %47 {strides = array<i32>} : memref<1x4x256xf32, #tpu.memory_space<vmem>>, vector<1x4x256xf32>,
    return
  }
  func.func @transform_0(%arg0: i32) -> (i32, i32, i32) {
    %c0_i32 = arith.constant 0 : i32
    %c0_i32_0 = arith.constant 0 : i32
    %c0_i32_1 = arith.constant 0 : i32
    return %arg0, %c0_i32, %c0_i32_0 : i32, i32, i32
  }
  func.func @transform_1(%arg0: i32) -> (i32, i32) {
    %c0_i32 = arith.constant 0 : i32
    %c0_i32_0 = arith.constant 0 : i32
    %c0_i32_1 = arith.constant 0 : i32
    return %c0_i32, %c0_i32_0 : i32, i32
  }
  func.func @transform_2(%arg0: i32) -> (i32, i32) {
    %c0_i32 = arith.constant 0 : i32
    %c0_i32_0 = arith.constant 0 : i32
    %c0_i32_1 = arith.constant 0 : i32
    return %c0_i32, %c0_i32_0 : i32, i32
  }
  func.func @transform_3(%arg0: i32) -> (i32, i32) {
    %c0_i32 = arith.constant 0 : i32
    %c0_i32_0 = arith.constant 0 : i32
    %c0_i32_1 = arith.constant 0 : i32
    return %c0_i32, %c0_i32_0 : i32, i32
  }
  func.func @transform_4(%arg0: i32) -> (i32, i32) {
    %c0_i32 = arith.constant 0 : i32
    %c0_i32_0 = arith.constant 0 : i32
    %c0_i32_1 = arith.constant 0 : i32
    return %c0_i32, %c0_i32_0 : i32, i32
  }
  func.func @transform_5(%arg0: i32) -> (i32, i32) {
    %c0_i32 = arith.constant 0 : i32
    %c0_i32_0 = arith.constant 0 : i32
    %c0_i32_1 = arith.constant 0 : i32
    return %c0_i32, %c0_i32_0 : i32, i32
  }
  func.func @transform_6(%arg0: i32) -> (i32, i32) {
    %c0_i32 = arith.constant 0 : i32
    %c0_i32_0 = arith.constant 0 : i32
    %c0_i32_1 = arith.constant 0 : i32
    return %c0_i32, %c0_i32_0 : i32, i32
  }
  func.func @transform_7(%arg0: i32) -> i32 {
    %c0_i32 = arith.constant 0 : i32
    %c0_i32_0 = arith.constant 0 : i32
    return %c0_i32 : i32
  }
  func.func @transform_8(%arg0: i32) -> (i32, i32, i32) {
    %c0_i32 = arith.constant 0 : i32
    %c0_i32_0 = arith.constant 0 : i32
    %c0_i32_1 = arith.constant 0 : i32
    return %arg0, %c0_i32, %c0_i32_0 : i32, i32, i32
  }
}

</mosaic_0001>

<bundles_post_ra>
// kernel: tpu_custom_call.1
= control target key start
LH: loop header
LB: loop body
LE: loop exit
PB: predicated region body
PF: predicated region fallthrough
CT: control target
= control target key end

     0   :  { %s804_s0 = inlined_call_operand.vmem [shape: f32[2,4,256], index: 0, kind: input, shape index: {}]   ;;  %s805_s1 = inlined_call_operand.vmem [shape: f32[4,2], index: 1, kind: input, shape index: {}]   ;;  %s806_s2 = inlined_call_operand.vmem [shape: f32[1,2], index: 2, kind: input, shape index: {}]   ;;  %s807_s3 = inlined_call_operand.vmem [shape: f32[4,2], index: 3, kind: input, shape index: {}]   ;;  %s808_s4 = inlined_call_operand.vmem [shape: f32[4,1], index: 4, kind: input, shape index: {}]   ;;  %s809_s5 = inlined_call_operand.vmem [shape: f32[4,1], index: 5, kind: input, shape index: {}]   ;;  %s810_s6 = inlined_call_operand.vmem [shape: f32[1,4], index: 6, kind: input, shape index: {}]   ;;  %s811_s7 = inlined_call_operand.<no memory space> [shape: f32[1], index: 7, kind: input, shape index: {}]   ;;  %s812_s8 = inlined_call_operand.hbm [shape: f32[2,4,256], index: 8, kind: output, shape index: {}]  }
   0x1   :  { %13 = sst [smem:[#allocation2]] %s811_s7 }
   0x2   :  { %14 = vsyncpa [#allocation4], 0 }
   0x3   :  { %16 = vsyncpa [#allocation4 + $0x1], 0  ;;  %s675_s29 = smov 0   ;;  %s677_s30 = smov 0  }
   0x4   :  { %s679_s9 = smov 0   ;;  %s681_s10 = smov 0  }
   0x5 LB: > { %s696_s6 = sadd.s32 4294967295, %s622_s10   ;;  %s487_s7 = sadd.s32 4294967294, %s622_s10   ;;  %s622_s10 = sphi %s681_s10, %s818_s10   ;;  %s618_s9 = sphi %s679_s9, %s817_s9   ;;  %s614_s30 = sphi %s677_s30, %s816_s30   ;;  %s610_s29 = sphi %s675_s29, %s815_s29  }
   0x6   : > { %s700_s11 = sadd.s32 1, %s622_s10   ;;  %s202_s12 = sadd.s32 1, %s618_s9 }
   0x7   : > { %s199_s13 = ssub.s32 %s622_s10, %s700_s11  ;;  %p212_p0 = scmp.ne.s32.totalorder %s618_s9, %s614_s30 }
   0x8   : > { %p200_p1 = scmp.eq.s32.totalorder %s199_s13, 0  ;;  %p213_p2 = scmp.eq.s32.totalorder %s696_s6, 1 }
   0x9   : > { %p218_p3 = scmp.ne.s32.totalorder %s614_s30, %s610_s29  ;;  %p219_p4 = scmp.eq.s32.totalorder %s487_s7, 1 }
   0xa   : > { %s711_s14 = scalar_select %p200_p1, %s618_s9, %s202_s12  }
   0xb   : > { %p713_p5 = por %p213_p2, %p212_p0  ;;  %p717_p6 = por %p219_p4, %p218_p3 }
   0xc   : > { %p490_p7 = scmp.ge.s32.totalorder %s622_s10, 1  ;;  %p266_p8 = scmp.lt.s32.totalorder %s622_s10, 3 }
   0xe   : > { %p267_p9 = pnand %p490_p7, %p266_p8 }
   0xf   : > { %p300_p10 = scmp.lt.s32.totalorder (!%p267_p9), %s696_s6, 1  ;;  %vm309_vm0 = vcmask (!%p267_p9), 1043456   ;;  %v346_v5 = vld [vmem:[%s809_s5] sm:$0xf] (!%p267_p9)  ;;  %v624_v6 = vmov (!%p267_p9), 0   ;;  %vm321_vm1 = vcmask (!%p267_p9), 11264   ;;  %v331_v15 = vlaneseq (!%p267_p9) }
  0x10   : > { %270 = sbr.rel (%p267_p9) target bundleno = 519 (0x207), region = 52  ;;  %545 = vset.pattern.permute.xlu1 (!%p267_p9), %v624_v6  ;;  %546 = vset.pattern.permute.xlu0 (!%p267_p9), %v624_v6  ;;  %v316_v7 = vld [vmem:[%s805_s1] sm:$0xf] (!%p267_p9)  ;;  %v625_v35 = vmov (!%p267_p9), 839922192   ;;  %s503_s20 = sshll.u32 (!%p267_p9), %s696_s6, 7 }
  0x11   : > { %350 = vperm.xlu1 (!%p267_p9), %545, %v346_v5   ;;  %v332_v18 = vshrl.u32 (!%p267_p9), %v331_v15, 7  ;;  %v317_v19 = vld [vmem:[%s806_s2] sm:$0x1] (!%p267_p9)  ;;  %v353_v36 = vunpack.c.l.s4 (!%p267_p9), %v625_v35  ;;  %s762_s25 = scalar_lea.hbm (!%p267_p9), %s812_s8, %s503_s20  ;;  %s626_s27 = smov (!%p267_p9), [#allocation3]  }
  0x12   : > { %v318_v24 = vld [vmem:[%s807_s3] sm:$0xf] (!%p267_p9)  ;;  %s564_s28 = sshll.u32 (!%p267_p9), %s626_s27, 4  ;;  %s565_s28 = int_to_ptr.vmem [resolvable:$false] %s564_s28 }
  0x13   : > { %v333_v22 = vsub.s32 (!%p267_p9), 0, %v332_v18  ;;  %v319_v28 = vld [vmem:[%s808_s4] sm:$0xf] (!%p267_p9)  ;;  %v354_v37 = vunpack.c.0.s8 (!%p267_p9), %v353_v36  ;;  %s566_s7 = scalar_lea.vmem (!%p267_p9), %s565_s28, 256 }
  0x15   : > { %v357_v38 = vsub.s32 (!%p267_p9), %v354_v37, %v332_v18 }
  0x17   : > { %s301_s17 = scalar_select %p300_p10, %s696_s6, 1 }
  0x19   : > { %s502_s18 = sshll.u32 %s301_s17, 3  ;;  %s347_s17 = sld [smem:[#allocation2]] }
  0x1a   : > { %s304_s21 = scalar_lea.vmem %s804_s0, %s502_s18  ;;  %s297_s18 = sand.u32 1, %s614_s30  }
  0x1b   : > { %v728_v0 = vld [vmem:[%s304_s21] sm:$0xff]  ;;  %s491_s19 = sshll.u32 %s297_s18, 3  ;;  %s414_s26 = scalar_lea.sflag [#allocation4], %s297_s18 }
  0x1c   : > { %v307_v1 = vcombine.high %v728_v0, %v728_v0  ;;  %v310_v2 = vsel %vm309_vm0, %v728_v0, 0.0  ;;  %s299_s21 = scalar_lea.vmem [#allocation3], %s491_s19 }
  0x1d   : > { %s428_s22 = sshll.u32 %s299_s21, 4  ;;  %s764_s22 = int_to_ptr.vmem [resolvable:$true] %s428_s22 }
  0x1e   : > { %v311_v3 = vsel %vm309_vm0, %v307_v1, 0.0  ;;  %s560_s6 = scalar_lea.vmem %s764_s22, 128  ;;  %p567_p0 = scmp.lt.s32.totalorder %s764_s22, %s565_s28 }
  0x1f   : > { %v312_v4 = vadd.f32 %v311_v3, %v310_v2  ;;  %v378_v56 = vstv %s347_s17  ;;  %p561_p11 = scmp.ne.s32.totalorder %s764_s22, %s560_s6  ;;  %p568_p1 = scmp.lt.s32.totalorder %s566_s7, %s560_s6 }
  0x21   : > { %313 = vadd.xlane.f32.xlu0 %v312_v4  ;;  %p562_p12 = pnand %p561_p11, %p713_p5  ;;  %p569_p2 = por %p568_p1, %p567_p0 }
  0x23   : > { %p563_p13 = pneg %p562_p12 }
  0x25   : > { %p570_p3 = pnand %p569_p2, %p563_p13 }
  0x90   : > { %v351_v39 = vpop.permute.xlu1 %350 }
  0x91   : > { %v358_v40 = vrot.slane %v351_v39, %v357_v38 }
  0x93   : > { %v360_v41 = vmul.f32 %v358_v40, %v728_v0 }
  0x95   : > { %v362_v42 = vcombine.high %v360_v41, %v360_v41  ;;  %v364_v43 = vsel %vm309_vm0, %v360_v41, 0.0 }
  0x96   : > { %v365_v45 = vrot.slane %v364_v43, 4 }
  0x97   : > { %v371_v44 = vsel %vm309_vm0, %v362_v42, 0.0 }
  0x98   : > { %v372_v46 = vrot.slane %v371_v44, 4  ;;  %v366_v47 = vadd.f32 %v365_v45, %v364_v43 }
  0x9a   : > { %v373_v48 = vadd.f32 %v372_v46, %v371_v44  ;;  %v367_v49 = vrot.slane %v366_v47, 2 }
  0x9c   : > { %v374_v50 = vrot.slane %v373_v48, 2  ;;  %v368_v51 = vadd.f32 %v367_v49, %v366_v47 }
  0x9e   : > { %v375_v52 = vadd.f32 %v374_v50, %v373_v48  ;;  %v369_v53 = vrot.slane %v368_v51, 1 }
  0xa0   : > { %v376_v54 = vrot.slane %v375_v52, 1  ;;  %v370_v55 = vadd.f32 %v369_v53, %v368_v51 }
  0xa2   : > { %v377_v57 = vadd.f32 %v376_v54, %v375_v52  ;;  %v379_v58 = vadd.f32 %v378_v56, %v370_v55 }
  0xa4   : > { %v380_v59 = vadd.f32 %v378_v56, %v377_v57  ;;  %v495_v60 = vmul.f32 -1.442695, %v379_v58 }
  0xa6   : > { %v496_v61 = vmul.f32 -1.442695, %v380_v59 }
  0xae   : > { %v314_v8 = vpop.xlane.xlu0 %313 }
  0xaf   : > { %v315_v9 = vmul.f32 0.00390625, %v314_v8 }
  0xb1   : > { %v320_v10 = vmul.f32 %v316_v7, %v315_v9 }
  0xb3   : > { %v322_v11 = vsel %vm321_vm1, %v320_v10, 0.0 }
  0xb4   : > { %v323_v12 = vrot.slane %v322_v11, 4 }
  0xb6   : > { %v324_v13 = vadd.f32 %v323_v12, %v322_v11 }
  0xb8   : > { %v325_v14 = vrot.slane %v324_v13, 2 }
  0xba   : > { %v326_v16 = vadd.f32 %v325_v14, %v324_v13 }
  0xbc   : > { %v327_v17 = vrot.slane %v326_v16, 1 }
  0xbe   : > { %v328_v20 = vadd.f32 %v327_v17, %v326_v16 }
  0xc0   : > { %v329_v21 = vadd.f32 %v328_v20, %v317_v19 }
  0xc2   : > { %v330_v23 = vmax.f32 %v329_v21, 0.0 }
  0xc4   : > { %v334_v25 = vrot.slane %v330_v23, %v333_v22 }
  0xc6   : > { %v335_v26 = vmul.f32 %v334_v25, %v318_v24 }
  0xc8   : > { %v336_v27 = vsel %vm321_vm1, %v335_v26, 0.0 }
  0xc9   : > { %337 = vadd.xlane.f32.xlu0 %v336_v27 }
 0x156   : > { %v338_v29 = vpop.xlane.xlu0 %337 }
 0x157   : > { %v339_v30 = vadd.f32 %v338_v29, %v319_v28 }
 0x159   : > { %v494_v31 = vmul.f32 -1.442695, %v339_v30 }
 0x15b   : > { %548 = vpow2.f32 %v494_v31 }
 0x165   : > { %v549_v32 = vpop.eup %548 }
 0x166   : > { %v343_v33 = vadd.f32 1.0, %v549_v32 }
 0x168   : > { %550 = vrcp.f32 %v343_v33 }
 0x169   : > { %552 = vpow2.f32 %v495_v60 }
 0x16a   : > { %554 = vpow2.f32 %v496_v61 }
 0x172   : > { %v551_v34 = vpop.eup %550 }
 0x173   : > { %395 = vperm.xlu1 %545, %v551_v34   ;;  %v553_v62 = vpop.eup %552 }
 0x174   : > { %v555_v63 = vpop.eup %554  ;;  %v387_v1 = vadd.f32 1.0, %v553_v62 }
 0x175   : > { %v388_v2 = vadd.f32 1.0, %v555_v63 }
 0x176   : > { %556 = vrcp.f32 %v387_v1 }
 0x177   : > { %558 = vrcp.f32 %v388_v2 }
 0x180   : > { %v557_v3 = vpop.eup %556 }
 0x181   : > { %v559_v4 = vpop.eup %558 }
 0x182   : > { %v408_v5 = vcombine.low %v557_v3, %v559_v4 }
 0x184   : > { %v410_v8 = vmul.f32 %v408_v5, %v728_v0 }
 0x1f2   : > { %v396_v6 = vpop.permute.xlu1 %395 }
 0x1f3   : > { %v403_v7 = vrot.slane %v396_v6, %v357_v38 }
 0x1f5   : > { %v405_v9 = vmul.f32 %v403_v7, %v728_v0 }
 0x1f7   : > { %v411_v10 = vmax.f32 %v405_v9, %v410_v8 }
 0x1f9   : > { %412 = vst [vmem:[%s299_s21] sm:$0xff] %v411_v10 }
 0x1fa   : > { %573 = shalt.err (!%p570_p3)
}
 0x1fb   : > { %s574_s12 = scalar_lea.hbm %s762_s25, 128  ;;  %s578_s18 = scalar_lea.hbm %s812_s8, 256 }
 0x1fc   : > { %p575_p4 = scmp.ne.s32.totalorder %s762_s25, %s574_s12  ;;  %p579_p9 = scmp.lt.u32.totalorder %s762_s25, %s812_s8 }
 0x1fd   : > { %p580_p10 = scmp.lt.u32.totalorder %s578_s18, %s574_s12  ;;  %p582_p12 = scmp.lt.u32.totalorder %s574_s12, %s762_s25 }
 0x1fe   : > { %p576_p7 = pnand %p575_p4, %p713_p5 }
 0x1ff   : > { %p581_p11 = por %p580_p10, %p579_p9 }
 0x200   : > { %p577_p8 = pneg %p576_p7 }
 0x201   : > { %p583_p13 = por %p582_p12, %p581_p11 }
 0x203   : > { %p584_p0 = pnand %p583_p13, %p577_p8 }
 0x205   : > { %587 = shalt.err (!%p584_p0)
}
 0x206   : > { %504 = dma.vmem_to_hbm [thread:$0]  (%p713_p5), %s764_s22, 128, %s762_s25, %s414_s26  }
 0x207 PF: > { %p510_p1 = scmp.ge.s32.totalorder %s622_s10, 2  ;;  %s440_s21 = sand.u32 1, %s610_s29  }
 0x208   : > { %s441_s23 = scalar_lea.sflag [#allocation4], %s440_s21 }
 0x209   : > { %p507_p2 = pnand %p510_p1, %p717_p6 }
 0x20b   : > { %605 = dma.done.wait (!%p507_p2), %s441_s23, 128  }
 0x20c   : > { %607 = vsyncadd (!%p507_p2), %s441_s23, 4294967168  ;;  %p19_p3 = scmp.ge.s32.totalorder %s700_s11, 4   ;;  %s815_s29 = smov %s614_s30 }
 0x20d   : > { %s816_s30 = smov %s618_s9  ;;  %s817_s9 = smov %s711_s14 }
 0x20e   : > { %s818_s10 = smov %s700_s11  ;;  %21 = sbr.rel (!%p19_p3) target bundleno = 5 (0x5), region = 87 }
 0x215   :  { %446 = vsyncpa [#allocation4], 1 }
 0x216   :  { %448 = vsyncpa [#allocation4 + $0x1], 1 }

</bundles_post_ra>
